<compile_context>
chip_gen: v7x
topology: tpu7x:2x2x1
jax: 0.10.0
libtpu: 0.0.40
codegen_flags: <defaults>
</compile_context>

<pallas_src>
import jax
import jax.numpy as jnp
from jax.experimental import pallas as pl
from jax.experimental.pallas import tpu as pltpu

_HEAD_PAD = 128   # fused head width held in VMEM (MXU lane width)
_OUT_W = 8        # lanes actually stored to HBM: col 0 -> y, cols 1:3 -> s, rest pad
_BIAS_W = 128     # packed-bias lane width (requires hidden <= 128)


def _net_kernel(x_ref, w1_ref, w2_ref, w3_ref, wh_ref, b_ref, out_ref):
    hid = w1_ref.shape[1]
    cdt = w1_ref.dtype  # compute dtype fed to the MXU (f32, or bf16 on v6e/v7x)

    # Cast x inside the kernel (VPU is free here; avoids an extra wrapper HBM pass).
    x = x_ref[...].astype(cdt)

    # fc1 + bias + relu   (dropout p=0.1 is identity at inference)
    # TODO(synk): training-mode dropout (p=0.1) not implemented; eval-mode identity used.
    h = jnp.dot(x, w1_ref[...], preferred_element_type=jnp.float32)
    h = jnp.maximum(h + b_ref[0:1, :hid], 0.0).astype(cdt)

    # fc2 + bias + relu
    h = jnp.dot(h, w2_ref[...], preferred_element_type=jnp.float32)
    h = jnp.maximum(h + b_ref[1:2, :hid], 0.0).astype(cdt)

    # fc3 + bias + relu
    h = jnp.dot(h, w3_ref[...], preferred_element_type=jnp.float32)
    h = jnp.maximum(h + b_ref[2:3, :hid], 0.0).astype(cdt)

    # Fused head [fc4 | fc5 | pad] computed 128-wide in VMEM, but only the first
    # _OUT_W lanes are stored to HBM (writeback was the dominant traffic before).
    # GradientReversal is identity in the forward pass.
    out = jnp.dot(h, wh_ref[...], preferred_element_type=jnp.float32)
    ow = out_ref.shape[1]
    out_ref[...] = (out[:, :ow] + b_ref[3:4, :ow]).astype(out_ref.dtype)


def _round_up(n, m):
    return ((n + m - 1) // m) * m


def pack_params(params, *, compute_dtype=jnp.float32):
    """Pack/cast parameters once per parameter set (hoisted out of the per-call path).

    Returns a dict of arrays consumed directly by net_forward.
    compute_dtype=jnp.bfloat16 is only recommended on v6e/v7x; keep f32 on v5e.
    """
    hid = params["w1"].shape[1]
    assert hid <= _BIAS_W, f"hidden={hid} > {_BIAS_W} not supported by packed bias buffer"
    assert params["w4"].shape == (hid, 1) and params["w5"].shape == (hid, 2)

    # fuse fc4 || fc5 into one (hid, 128) head weight (resident in VMEM, 16 KB)
    w_head = jnp.zeros((hid, _HEAD_PAD), jnp.float32)
    w_head = w_head.at[:, 0:1].set(params["w4"]).at[:, 1:3].set(params["w5"])

    # pack all five biases into one (4, 128) buffer -> single resident DMA
    biases = jnp.zeros((4, _BIAS_W), jnp.float32)
    biases = biases.at[0, :hid].set(params["b1"][0])
    biases = biases.at[1, :hid].set(params["b2"][0])
    biases = biases.at[2, :hid].set(params["b3"][0])
    biases = biases.at[3, 0:1].set(params["b4"][0]).at[3, 1:3].set(params["b5"][0])

    return dict(
        w1=params["w1"].astype(compute_dtype),
        w2=params["w2"].astype(compute_dtype),
        w3=params["w3"].astype(compute_dtype),
        wh=w_head.astype(compute_dtype),
        b=biases,  # biases stay f32 (added to the f32 accumulator)
    )


def net_forward(x, packed, *, block_b=2048, out_dtype=jnp.float32):
    """x: (B, D_in).  packed: output of pack_params().

    Returns (y, s) with shapes (B, 1), (B, 2) — eval-mode forward of `Net`.
    """
    B, d_in = x.shape
    hid = packed["w1"].shape[1]
    assert packed["w1"].shape[0] == d_in

    # --- batch tiling: tb rows per grid step (multiple of 8) -------------------
    tb = min(block_b, _round_up(B, 8))
    # v7x has two TensorCores: when B is big enough, ensure the "parallel" batch
    # grid has at least 2 steps so both cores get work.
    if B >= 16 and pl.cdiv(B, tb) < 2:
        tb = _round_up(pl.cdiv(B, 2), 8)
    grid = (pl.cdiv(B, tb),)  # ragged tail handled by Pallas partial-block masking

    resident = lambda i: (0, 0)  # params stay put across batch steps

    flops = 2 * B * (d_in * hid + 2 * hid * hid + hid * _HEAD_PAD)
    bytes_accessed = int(
        x.size * x.dtype.itemsize
        + B * _OUT_W * jnp.dtype(out_dtype).itemsize
        + sum(int(packed[k].size) * packed[k].dtype.itemsize
              for k in ("w1", "w2", "w3", "wh", "b"))
    )

    out = pl.pallas_call(
        _net_kernel,
        out_shape=jax.ShapeDtypeStruct((B, _OUT_W), out_dtype),
        grid=grid,
        in_specs=[
            pl.BlockSpec((tb, d_in), lambda i: (i, 0)),        # x tile (streamed)
            pl.BlockSpec((d_in, hid), resident),               # w1 (resident)
            pl.BlockSpec((hid, hid), resident),                # w2
            pl.BlockSpec((hid, hid), resident),                # w3
            pl.BlockSpec((hid, _HEAD_PAD), resident),          # fused head weight
            pl.BlockSpec((4, _BIAS_W), resident),              # packed biases
        ],
        out_specs=pl.BlockSpec((tb, _OUT_W), lambda i: (i, 0)),
        compiler_params=pltpu.CompilerParams(
            dimension_semantics=("parallel",)),
        cost_estimate=pl.CostEstimate(
            flops=flops, transcendentals=0, bytes_accessed=bytes_accessed),
    )(x, packed["w1"], packed["w2"], packed["w3"], packed["wh"], packed["b"])

    y = out[:, 0:1].astype(jnp.float32)
    s = out[:, 1:3].astype(jnp.float32)
    return y, s


def init_params(key, input_shape, hidden=32):
    """Deterministic init mimicking nn.Linear's U(-1/sqrt(fan_in), 1/sqrt(fan_in))."""
    def linear(k, fan_in, fan_out):
        kw, kb = jax.random.split(k)
        bound = 1.0 / jnp.sqrt(float(fan_in))
        w = jax.random.uniform(kw, (fan_in, fan_out), jnp.float32, -bound, bound)
        b = jax.random.uniform(kb, (1, fan_out), jnp.float32, -bound, bound)
        return w, b

    k1, k2, k3, k4, k5 = jax.random.split(key, 5)
    w1, b1 = linear(k1, input_shape, hidden)
    w2, b2 = linear(k2, hidden, hidden)
    w3, b3 = linear(k3, hidden, hidden)
    w4, b4 = linear(k4, hidden, 1)
    w5, b5 = linear(k5, hidden, 2)
    return dict(w1=w1, b1=b1, w2=w2, b2=b2, w3=w3, b3=b3,
                w4=w4, b4=b4, w5=w5, b5=b5)


def net_forward_ref(x, p):
    h = jnp.maximum(x @ p["w1"] + p["b1"], 0.0)
    h = jnp.maximum(h @ p["w2"] + p["b2"], 0.0)
    h = jnp.maximum(h @ p["w3"] + p["b3"], 0.0)
    return h @ p["w4"] + p["b4"], h @ p["w5"] + p["b5"]


if __name__ == "__main__":
    key = jax.random.PRNGKey(0)
    kx, kp = jax.random.split(key)

    B, D_in = 8, 16  # small shapes: batch=8, input_shape=16, hidden=32
    x = jax.random.normal(kx, (B, D_in), jnp.float32)
    params = init_params(kp, D_in, hidden=32)

    packed = pack_params(params)            # packing hoisted: once per parameter set
    y, s = net_forward(x, packed)
    jax.block_until_ready((y, s))

    y_ref, s_ref = net_forward_ref(x, params)
    assert y.shape == (B, 1) and s.shape == (B, 2)
    # f32 compute path must match the reference tightly (bf16 path would need looser tol).
    assert jnp.allclose(y, y_ref, atol=1e-5), "y mismatch vs reference"
    assert jnp.allclose(s, s_ref, atol=1e-5), "s mismatch vs reference"

    print("KERNEL_OK")
</pallas_src>

<mosaic_0001>
module attributes {stable_mosaic.version = 11 : i64} {
  func.func @_net_kernel(%arg0: i32, %arg1: memref<8x16xf32, #tpu.memory_space<vmem>>, %arg2: memref<16x32xf32, #tpu.memory_space<vmem>>, %arg3: memref<32x32xf32, #tpu.memory_space<vmem>>, %arg4: memref<32x32xf32, #tpu.memory_space<vmem>>, %arg5: memref<32x128xf32, #tpu.memory_space<vmem>>, %arg6: memref<4x128xf32, #tpu.memory_space<vmem>>, %arg7: memref<8x8xf32, #tpu.memory_space<vmem>>) attributes {dimension_semantics = [#tpu.dimension_semantics<parallel>], iteration_bounds = array<i64: 1>, scalar_prefetch = 0 : i64, scratch_operands = 0 : i64, tpu.core_type = #tpu.core_type<tc>, window_params = [{transform_indices = @transform_0, window_bounds = array<i64: 8, 16>}, {pipeline_mode = #tpu.pipeline_mode<synchronous>, transform_indices = @transform_1, window_bounds = array<i64: 16, 32>}, {pipeline_mode = #tpu.pipeline_mode<synchronous>, transform_indices = @transform_2, window_bounds = array<i64: 32, 32>}, {pipeline_mode = #tpu.pipeline_mode<synchronous>, transform_indices = @transform_3, window_bounds = array<i64: 32, 32>}, {pipeline_mode = #tpu.pipeline_mode<synchronous>, transform_indices = @transform_4, window_bounds = array<i64: 32, 128>}, {pipeline_mode = #tpu.pipeline_mode<synchronous>, transform_indices = @transform_5, window_bounds = array<i64: 4, 128>}, {transform_indices = @transform_6, window_bounds = array<i64: 8, 8>}]} {
    %c0 = arith.constant 0 : index
    %c0_0 = arith.constant 0 : index
    %0 = vector.load %arg1[%c0, %c0_0] : memref<8x16xf32, #tpu.memory_space<vmem>>, vector<8x16xf32>
    %c0_1 = arith.constant 0 : index
    %c0_2 = arith.constant 0 : index
    %1 = vector.load %arg2[%c0_1, %c0_2] : memref<16x32xf32, #tpu.memory_space<vmem>>, vector<16x32xf32>
    %cst = arith.constant dense<0.000000e+00> : vector<8x32xf32>
    %2 = tpu.matmul %0, %1, %cst {dimension_numbers = #tpu.dot_dimension_numbers<[1], [0], [0], [1], [0, 0, 1, 1], [], []>} : vector<8x16xf32>, vector<16x32xf32>, vector<8x32xf32> -> vector<8x32xf32>
    %c0_3 = arith.constant 0 : index
    %c0_4 = arith.constant 0 : index
    %3 = vector.load %arg6[%c0_3, %c0_4] : memref<4x128xf32, #tpu.memory_space<vmem>>, vector<1x32xf32>
    %4 = vector.broadcast %3 : vector<1x32xf32> to vector<8x32xf32>
    %5 = arith.addf %2, %4 : vector<8x32xf32>
    %cst_5 = arith.constant 0.000000e+00 : f32
    %6 = vector.broadcast %cst_5 : f32 to vector<8x32xf32>
    %7 = arith.maximumf %5, %6 : vector<8x32xf32>
    %c0_6 = arith.constant 0 : index
    %c0_7 = arith.constant 0 : index
    %8 = vector.load %arg3[%c0_6, %c0_7] : memref<32x32xf32, #tpu.memory_space<vmem>>, vector<32x32xf32>
    %cst_8 = arith.constant dense<0.000000e+00> : vector<8x32xf32>
    %9 = tpu.matmul %7, %8, %cst_8 {dimension_numbers = #tpu.dot_dimension_numbers<[1], [0], [0], [1], [0, 0, 1, 1], [], []>} : vector<8x32xf32>, vector<32x32xf32>, vector<8x32xf32> -> vector<8x32xf32>
    %c1 = arith.constant 1 : index
    %c0_9 = arith.constant 0 : index
    %10 = vector.load %arg6[%c1, %c0_9] : memref<4x128xf32, #tpu.memory_space<vmem>>, vector<1x32xf32>
    %11 = vector.broadcast %10 : vector<1x32xf32> to vector<8x32xf32>
    %12 = arith.addf %9, %11 : vector<8x32xf32>
    %cst_10 = arith.constant 0.000000e+00 : f32
    %13 = vector.broadcast %cst_10 : f32 to vector<8x32xf32>
    %14 = arith.maximumf %12, %13 : vector<8x32xf32>
    %c0_11 = arith.constant 0 : index
    %c0_12 = arith.constant 0 : index
    %15 = vector.load %arg4[%c0_11, %c0_12] : memref<32x32xf32, #tpu.memory_space<vmem>>, vector<32x32xf32>
    %cst_13 = arith.constant dense<0.000000e+00> : vector<8x32xf32>
    %16 = tpu.matmul %14, %15, %cst_13 {dimension_numbers = #tpu.dot_dimension_numbers<[1], [0], [0], [1], [0, 0, 1, 1], [], []>} : vector<8x32xf32>, vector<32x32xf32>, vector<8x32xf32> -> vector<8x32xf32>
    %c2 = arith.constant 2 : index
    %c0_14 = arith.constant 0 : index
    %17 = vector.load %arg6[%c2, %c0_14] : memref<4x128xf32, #tpu.memory_space<vmem>>, vector<1x32xf32>
    %18 = vector.broadcast %17 : vector<1x32xf32> to vector<8x32xf32>
    %19 = arith.addf %16, %18 : vector<8x32xf32>
    %cst_15 = arith.constant 0.000000e+00 : f32
    %20 = vector.broadcast %cst_15 : f32 to vector<8x32xf32>
    %21 = arith.maximumf %19, %20 : vector<8x32xf32>
    %c0_16 = arith.constant 0 : index
    %c0_17 = arith.constant 0 : index
    %22 = vector.load %arg5[%c0_16, %c0_17] : memref<32x128xf32, #tpu.memory_space<vmem>>, vector<32x128xf32>
    %cst_18 = arith.constant dense<0.000000e+00> : vector<8x128xf32>
    %23 = tpu.matmul %21, %22, %cst_18 {dimension_numbers = #tpu.dot_dimension_numbers<[1], [0], [0], [1], [0, 0, 1, 1], [], []>} : vector<8x32xf32>, vector<32x128xf32>, vector<8x128xf32> -> vector<8x128xf32>
    %24 = vector.extract_strided_slice %23 {offsets = [0, 0], sizes = [8, 8], strides = [1, 1]} : vector<8x128xf32> to vector<8x8xf32>
    %c3 = arith.constant 3 : index
    %c0_19 = arith.constant 0 : index
    %25 = vector.load %arg6[%c3, %c0_19] : memref<4x128xf32, #tpu.memory_space<vmem>>, vector<1x8xf32>
    %26 = vector.broadcast %25 : vector<1x8xf32> to vector<8x8xf32>
    %27 = arith.addf %24, %26 : vector<8x8xf32>
    %c0_20 = arith.constant 0 : index
    %c0_21 = arith.constant 0 : index
    %28 = vector.load %arg7[%c0_20, %c0_21] : memref<8x8xf32, #tpu.memory_space<vmem>>, vector<8x8xf32>
    tpu.vector_store %arg7[%c0_20, %c0_21], %27 {strides = array<i32>} : memref<8x8xf32, #tpu.memory_space<vmem>>, vector<8x8xf32>,
    return
  }
  func.func @transform_0(%arg0: i32) -> (i32, i32) {
    %c0_i32 = arith.constant 0 : i32
    %c0_i32_0 = arith.constant 0 : i32
    return %arg0, %c0_i32 : i32, i32
  }
  func.func @transform_1(%arg0: i32) -> (i32, i32) {
    %c0_i32 = arith.constant 0 : i32
    %c0_i32_0 = arith.constant 0 : i32
    %c0_i32_1 = arith.constant 0 : i32
    return %c0_i32, %c0_i32_0 : i32, i32
  }
  func.func @transform_2(%arg0: i32) -> (i32, i32) {
    %c0_i32 = arith.constant 0 : i32
    %c0_i32_0 = arith.constant 0 : i32
    %c0_i32_1 = arith.constant 0 : i32
    return %c0_i32, %c0_i32_0 : i32, i32
  }
  func.func @transform_3(%arg0: i32) -> (i32, i32) {
    %c0_i32 = arith.constant 0 : i32
    %c0_i32_0 = arith.constant 0 : i32
    %c0_i32_1 = arith.constant 0 : i32
    return %c0_i32, %c0_i32_0 : i32, i32
  }
  func.func @transform_4(%arg0: i32) -> (i32, i32) {
    %c0_i32 = arith.constant 0 : i32
    %c0_i32_0 = arith.constant 0 : i32
    %c0_i32_1 = arith.constant 0 : i32
    return %c0_i32, %c0_i32_0 : i32, i32
  }
  func.func @transform_5(%arg0: i32) -> (i32, i32) {
    %c0_i32 = arith.constant 0 : i32
    %c0_i32_0 = arith.constant 0 : i32
    %c0_i32_1 = arith.constant 0 : i32
    return %c0_i32, %c0_i32_0 : i32, i32
  }
  func.func @transform_6(%arg0: i32) -> (i32, i32) {
    %c0_i32 = arith.constant 0 : i32
    %c0_i32_0 = arith.constant 0 : i32
    return %arg0, %c0_i32 : i32, i32
  }
}

</mosaic_0001>

<bundles_post_ra>
// kernel: tpu_custom_call.1
= control target key start
LH: loop header
LB: loop body
LE: loop exit
PB: predicated region body
PF: predicated region fallthrough
CT: control target
= control target key end

     0   :  { %11 = vsyncpa [#allocation3], 0  ;;  %s829_s0 = inlined_call_operand.hbm [shape: f32[8,16], index: 0, kind: input, shape index: {}]   ;;  %s830_s1 = inlined_call_operand.hbm [shape: f32[16,32], index: 1, kind: input, shape index: {}]   ;;  %s831_s2 = inlined_call_operand.hbm [shape: f32[32,32], index: 2, kind: input, shape index: {}]   ;;  %s832_s3 = inlined_call_operand.hbm [shape: f32[32,32], index: 3, kind: input, shape index: {}]   ;;  %s833_s4 = inlined_call_operand.hbm [shape: f32[32,128], index: 4, kind: input, shape index: {}]   ;;  %s834_s5 = inlined_call_operand.vmem [shape: f32[4,128], index: 5, kind: input, shape index: {}]   ;;  %s835_s6 = inlined_call_operand.hbm [shape: f32[8,8], index: 6, kind: output, shape index: {}]  }
   0x1   :  { %12 = vsyncpa [#allocation6], 0 }
   0x2   :  { %13 = vsyncpa [#allocation9], 0 }
   0x3   :  { %14 = vsyncpa [#allocation4], 0  ;;  %s680_s21 = smov [#allocation5]   ;;  %s540_s25 = scalar_lea.hbm %s830_s1, 256 }
   0x4   :  { %s30_s22 = sshll.u32 %s680_s21, 4  ;;  %p541_p0 = scmp.ne.s32.totalorder %s830_s1, %s540_s25  ;;  %s31_s22 = int_to_ptr.vmem [resolvable:$true] %s30_s22 }
   0x5   :  { %p544_p1 = scmp.lt.u32.totalorder %s540_s25, %s830_s1 }
   0x7   :  { %p546_p2 = pnand %p544_p1, %p541_p0 }
   0x9   :  { %549 = shalt.err (!%p546_p2)
}
   0xa   :  { %s550_s30 = scalar_lea.vmem %s31_s22, 256  ;;  %p555_p4 = scmp.lt.s32.totalorder %s31_s22, %s31_s22 }
   0xb   :  { %p551_p3 = scmp.ne.s32.totalorder %s31_s22, %s550_s30  ;;  %p556_p5 = scmp.lt.s32.totalorder %s550_s30, %s550_s30 }
   0xd   :  { %p557_p6 = por %p556_p5, %p555_p4 }
   0xf   :  { %p558_p7 = pnand %p557_p6, %p551_p3 }
  0x11   :  { %561 = shalt.err (!%p558_p7)
}
  0x12   :  { %s681_s7 = smov 128   ;;  %s682_s8 = smov 8  }
  0x13   :  { %36 = dma.hbm_to_vmem [thread:$0]  %s830_s1, 256, %s31_s22, [#allocation6], %s681_s7, %s681_s7, %s682_s8  }
  0x14   :  { %s683_s11 = smov [#allocation8]   ;;  %s684_s13 = smov [#allocation2]  }
  0x15   :  { %s54_s12 = sshll.u32 %s683_s11, 4  ;;  %s21_s14 = sshll.u32 %s684_s13, 4  ;;  %s55_s12 = int_to_ptr.vmem [resolvable:$true] %s54_s12  ;;  %s22_s14 = int_to_ptr.vmem [resolvable:$true] %s21_s14 }
  0x16   :  { %s562_s17 = scalar_lea.hbm %s832_s3, 512 }
  0x17   :  { %p563_p8 = scmp.ne.s32.totalorder %s832_s3, %s562_s17  ;;  %p566_p9 = scmp.lt.u32.totalorder %s562_s17, %s832_s3 }
  0x19   :  { %p568_p10 = pnand %p566_p9, %p563_p8 }
  0x1b   :  { %571 = shalt.err (!%p568_p10)
}
  0x1c   :  { %s572_s1 = scalar_lea.vmem %s55_s12, 512  ;;  %p577_p12 = scmp.lt.s32.totalorder %s55_s12, %s55_s12 }
  0x1d   :  { %p573_p11 = scmp.ne.s32.totalorder %s55_s12, %s572_s1  ;;  %p578_p13 = scmp.lt.s32.totalorder %s572_s1, %s572_s1 }
  0x1f   :  { %p579_p0 = por %p578_p13, %p577_p12 }
  0x21   :  { %p580_p1 = pnand %p579_p0, %p573_p11 }
  0x23   :  { %583 = shalt.err (!%p580_p1)
}
  0x24   :  { %60 = dma.hbm_to_vmem [thread:$0]  %s832_s3, 512, %s55_s12, [#allocation9], %s681_s7, %s681_s7, %s682_s8  }
  0x25   :  { %s584_s26 = scalar_lea.hbm %s829_s0, 128 }
  0x26   :  { %p585_p2 = scmp.ne.s32.totalorder %s829_s0, %s584_s26  ;;  %p588_p3 = scmp.lt.u32.totalorder %s584_s26, %s829_s0 }
  0x28   :  { %p590_p4 = pnand %p588_p3, %p585_p2 }
  0x2a   :  { %593 = shalt.err (!%p590_p4)
}
  0x2b   :  { %s594_s9 = scalar_lea.vmem %s22_s14, 128  ;;  %p599_p6 = scmp.lt.s32.totalorder %s22_s14, %s22_s14 }
  0x2c   :  { %p595_p5 = scmp.ne.s32.totalorder %s22_s14, %s594_s9  ;;  %p600_p7 = scmp.lt.s32.totalorder %s594_s9, %s594_s9 }
  0x2e   :  { %p601_p8 = por %p600_p7, %p599_p6 }
  0x30   :  { %p602_p9 = pnand %p601_p8, %p595_p5 }
  0x32   :  { %605 = shalt.err (!%p602_p9)
}
  0x33   :  { %24 = dma.hbm_to_vmem [thread:$0]  %s829_s0, 128, %s22_s14, [#allocation3]  }
  0x34   :  { %s685_s11 = smov [#allocation7]   ;;  %s686_s13 = smov [#allocation10]  }
  0x35   :  { %s42_s12 = sshll.u32 %s685_s11, 4  ;;  %s66_s15 = sshll.u32 %s686_s13, 4  ;;  %s43_s12 = int_to_ptr.vmem [resolvable:$true] %s42_s12  ;;  %s67_s15 = int_to_ptr.vmem [resolvable:$true] %s66_s15 }
  0x36   :  { %s606_s18 = scalar_lea.hbm %s831_s2, 512 }
  0x37   :  { %p607_p10 = scmp.ne.s32.totalorder %s831_s2, %s606_s18  ;;  %p610_p11 = scmp.lt.u32.totalorder %s606_s18, %s831_s2 }
  0x39   :  { %p612_p12 = pnand %p610_p11, %p607_p10 }
  0x3b   :  { %615 = shalt.err (!%p612_p12)
}
  0x3c   :  { %s616_s0 = scalar_lea.vmem %s43_s12, 512  ;;  %p621_p0 = scmp.lt.s32.totalorder %s43_s12, %s43_s12 }
  0x3d   :  { %p617_p13 = scmp.ne.s32.totalorder %s43_s12, %s616_s0  ;;  %p622_p1 = scmp.lt.s32.totalorder %s616_s0, %s616_s0 }
  0x3f   :  { %p623_p2 = por %p622_p1, %p621_p0 }
  0x41   :  { %p624_p3 = pnand %p623_p2, %p617_p13 }
  0x43   :  { %627 = shalt.err (!%p624_p3)
}
  0x44   :  { %48 = dma.hbm_to_vmem [thread:$0]  %s831_s2, 512, %s43_s12, [#allocation6], %s681_s7, %s681_s7, %s682_s8  }
  0x45   :  { %s628_s25 = scalar_lea.hbm %s833_s4, 512 }
  0x46   :  { %p629_p4 = scmp.ne.s32.totalorder %s833_s4, %s628_s25  ;;  %p632_p5 = scmp.lt.u32.totalorder %s628_s25, %s833_s4 }
  0x48   :  { %p634_p6 = pnand %p632_p5, %p629_p4 }
  0x4a   :  { %637 = shalt.err (!%p634_p6)
}
  0x4b   :  { %s638_s30 = scalar_lea.vmem %s67_s15, 512  ;;  %p643_p8 = scmp.lt.s32.totalorder %s67_s15, %s67_s15 }
  0x4c   :  { %p639_p7 = scmp.ne.s32.totalorder %s67_s15, %s638_s30  ;;  %p644_p9 = scmp.lt.s32.totalorder %s638_s30, %s638_s30 }
  0x4e   :  { %p645_p10 = por %p644_p9, %p643_p8 }
  0x50   :  { %p646_p11 = pnand %p645_p10, %p639_p7 }
  0x52   :  { %649 = shalt.err (!%p646_p11)
}
  0x53   :  { %72 = dma.hbm_to_vmem [thread:$0]  %s833_s4, 512, %s67_s15, [#allocation9], %s681_s7, %s681_s7, %s682_s8  }
  0x54   :  { %672 = dma.done.wait [#allocation3], 128  }
  0x55   :  { %673 = vsyncadd [#allocation3], 4294967168 }
  0x56   :  { %674 = dma.done.wait [#allocation6], 768  }
  0x57   :  { %675 = vsyncadd [#allocation6], 4294966528 }
  0x58   :  { %676 = dma.done.wait [#allocation9], 1024  }
  0x59   :  { %677 = vsyncadd [#allocation9], 4294966272  ;;  %v687_v0 = vmov 0.0|0.0   ;;  %vm688_vm0 = vmmov 0   ;;  %v689_v1 = vmov 0.0   ;;  %v91_v2 = vld [vmem:[#allocation5] sm:$0xff] }
  0x5a   :  { %508 = vmatprep.subr.bf16.mxu0 %v687_v0  ;;  %472 = vmatprep.mubr.msk.f32.mxu0 %vm688_vm0, %v689_v1  ;;  %v92_v3 = vld [vmem:[#allocation5 + $0x8] sm:$0xff]  ;;  %v173_v5 = vld [vmem:[#allocation7] sm:$0xff]  ;;  %v174_v6 = vld [vmem:[#allocation7 + $0x8] sm:$0xff]  ;;  %vm98_vm1 = vcmask 130048   ;;  %vm182_vm2 = vcmask 261120   ;;  %s690_s15 = smov [#allocation11]  }
  0x5b   :  { %511 = vmatprep.subr.bf16.mxu1 %v687_v0  ;;  %483 = vmatprep.mubr.msk.f32.mxu1 %vm688_vm0, %v689_v1  ;;  %v509_v4 = vpack.c.bf16 %v92_v3, %v91_v2  ;;  %v512_v7 = vpack.c.bf16 %v174_v6, %v173_v5  ;;  %v90_v8 = vld [vmem:[#allocation2] sm:$0xff]  ;;  %v175_v9 = vld [vmem:[#allocation7 + $0x10] sm:$0xff]  ;;  %v176_v10 = vld [vmem:[#allocation7 + $0x18] sm:$0xff]  ;;  %s431_s16 = sshll.u32 %s690_s15, 4  ;;  %vm423_vm3 = vcmask 64512   ;;  %s432_s16 = int_to_ptr.vmem [resolvable:$true] %s431_s16 }
  0x5c   :  { %v515_v11 = vpack.c.bf16 %v176_v10, %v175_v9  ;;  %v257_v12 = vld [vmem:[#allocation8] sm:$0xff]  ;;  %v258_v13 = vld [vmem:[#allocation8 + $0x8] sm:$0xff]  ;;  %v259_v20 = vld [vmem:[#allocation8 + $0x10] sm:$0xff]  ;;  %s650_s17 = scalar_lea.vmem %s432_s16, 128  ;;  %p655_p13 = scmp.lt.s32.totalorder %s432_s16, %s432_s16 }
  0x5d   :  { %510 = vmatpush3.bf16.msra.mxu0 %v509_v4  ;;  %513 = vmatpush3.bf16.msra.mxu1 %v512_v7  ;;  %v518_v14 = vpack.c.bf16 %v258_v13, %v257_v12  ;;  %v442_v15 = vld [vmem:[%s834_s5] ss:$0 sm:$0xff]  ;;  %v260_v21 = vld [vmem:[#allocation8 + $0x18] sm:$0xff]  ;;  %v340_v23 = vld [vmem:[#allocation10] sm:$0xff]  ;;  %p651_p12 = scmp.ne.s32.totalorder %s432_s16, %s650_s17  ;;  %p656_p0 = scmp.lt.s32.totalorder %s650_s17, %s650_s17 }
  0x5e   :  { %517 = vmatprep.subr.bf16.mxu0 %v687_v0  ;;  %514 = vmatprep.subr.bf16.mxu1 %v687_v0  ;;  %v521_v22 = vpack.c.bf16 %v260_v21, %v259_v20  ;;  %v341_v24 = vld [vmem:[#allocation10 + $0x8] sm:$0xff]  ;;  %v342_v31 = vld [vmem:[#allocation10 + $0x10] sm:$0xff]  ;;  %v343_v32 = vld [vmem:[#allocation10 + $0x18] sm:$0xff] }
  0x5f   :  { %v524_v25 = vpack.c.bf16 %v341_v24, %v340_v23  ;;  %v444_v26 = vld [vmem:[%s834_s5 + $0x1] ss:$0 sm:$0xff]  ;;  %v527_v33 = vpack.c.bf16 %v343_v32, %v342_v31  ;;  %v446_v34 = vld [vmem:[%s834_s5 + $0x2] ss:$0 sm:$0xff]  ;;  %v449_v39 = vld [vmem:[%s834_s5 + $0x3] ss:$0 sm:$0xff]  ;;  %p657_p1 = por %p656_p0, %p655_p13 }
  0x60   :  { %473 = vmatmul.mubr.msk.f32.vlgmr.msra.gmra.mrb[0].mxu0 %vm98_vm1, %v90_v8 }
  0x61   :  { %494 = vmatprep.mubr.msk.f32.mxu0 %vm688_vm0, %v689_v1  ;;  %516 = vmatpush3.bf16.msra.mxu1 %v515_v11  ;;  %p658_p2 = pnand %p657_p1, %p651_p12 }
  0x62   :  { %523 = vmatprep.subr.bf16.mxu1 %v687_v0  ;;  %519 = vmatpush3.bf16.msra.mxu0 %v518_v14 }
  0x63   :  { %520 = vmatprep.subr.bf16.mxu0 %v687_v0 }
  0x66   :  { %522 = vmatpush3.bf16.msra.mxu0 %v521_v22 }
 0x133   :  { %v168_v16 = vpop.f32.mrb[0].mxu0 }
 0x134   :  { %v169_v17 = vadd.f32 %v442_v15, %v168_v16  ;;  %v474_v18 = vpop.f32.mrb[1].mxu0 }
 0x136   :  { %v172_v19 = vmax.f32 %v169_v17, 0.0 }
 0x138   :  { %484 = vmatmul.mubr.msk.f32.vlgmr.msra.gmra.mrb[0].mxu1 %vm182_vm2, %v172_v19 }
 0x139   :  { %505 = vmatprep.mubr.msk.f32.mxu1 %vm688_vm0, %v689_v1  ;;  %525 = vmatpush3.bf16.msra.mxu1 %v524_v25 }
 0x13a   :  { %526 = vmatprep.subr.bf16.mxu1 %v687_v0 }
 0x13d   :  { %528 = vmatpush3.bf16.msra.mxu1 %v527_v33 }
 0x20b   :  { %v252_v27 = vpop.f32.mrb[0].mxu1 }
 0x20c   :  { %v253_v28 = vadd.f32 %v444_v26, %v252_v27  ;;  %v485_v29 = vpop.f32.mrb[1].mxu1 }
 0x20e   :  { %v256_v30 = vmax.f32 %v253_v28, 0.0 }
 0x210   :  { %495 = vmatmul.mubr.msk.f32.vlgmr.msra.gmra.mrb[2].mxu0 %vm182_vm2, %v256_v30 }
 0x2e3   :  { %v335_v35 = vpop.f32.mrb[2].mxu0 }
 0x2e4   :  { %v336_v36 = vadd.f32 %v446_v34, %v335_v35  ;;  %v496_v37 = vpop.f32.mrb[3].mxu0 }
 0x2e6   :  { %v339_v38 = vmax.f32 %v336_v36, 0.0 }
 0x2e8   :  { %506 = vmatmul.mubr.msk.f32.vlgmr.msra.gmra.mrb[2].mxu1 %vm182_vm2, %v339_v38 }
 0x3bb   :  { %v413_v40 = vpop.f32.mrb[2].mxu1 }
 0x3bc   :  { %v422_v41 = vadd.f32 %v449_v39, %v413_v40  ;;  %v507_v42 = vpop.f32.mrb[3].mxu1 }
 0x3be   :  { %424 = vst.msk [vmem:[#allocation11] sm:$0xff] %vm423_vm3, %v422_v41 }
 0x3bf   :  { %661 = shalt.err (!%p658_p2)
}
 0x3c0   :  { %s662_s20 = scalar_lea.hbm %s835_s6, 128 }
 0x3c1   :  { %p663_p3 = scmp.ne.s32.totalorder %s835_s6, %s662_s20  ;;  %p666_p4 = scmp.lt.u32.totalorder %s662_s20, %s835_s6 }
 0x3c3   :  { %p668_p5 = pnand %p666_p4, %p663_p3 }
 0x3c5   :  { %671 = shalt.err (!%p668_p5)
}
 0x3c6   :  { %434 = dma.vmem_to_hbm [thread:$0]  %s432_s16, 128, %s835_s6, [#allocation4]  }
 0x3c7   :  { %678 = dma.done.wait [#allocation4], 128  }
 0x3c8   :  { %679 = vsyncadd [#allocation4], 4294967168 }
 0x3c9   :  { %438 = vsyncpa [#allocation3], 1 }
 0x3ca   :  { %439 = vsyncpa [#allocation6], 1 }
 0x3cb   :  { %440 = vsyncpa [#allocation9], 1 }
 0x3cc   :  { %441 = vsyncpa [#allocation4], 1 }

</bundles_post_ra>
